<compile_context>
chip_gen: v7x
topology: tpu7x:2x2x1
jax: 0.10.0
libtpu: 0.0.40
codegen_flags: <defaults>
</compile_context>

<pallas_src>
import functools

import jax
import jax.numpy as jnp
import numpy as np
from jax.experimental import pallas as pl
from jax.experimental.pallas import tpu as pltpu

_LANE = 128
# Per-input-tile byte budget; resident = 2 inputs x 2 pipeline buffers x tile
# => ~32 MiB, which fits the smallest per-core VMEM (v7x: 64 MiB physical).
_DEFAULT_TILE_BUDGET = 8 * 1024 * 1024


def _round_up(x, m):
    return ((x + m - 1) // m) * m


def _diffloss_kernel(c_ref, s_ref, out_ref, acc_ref, rc_ref, rs_ref, *, scale):
    i = pl.program_id(1)          # row-block index within this parallel slice
    j = pl.program_id(2)          # feature (reduction) block index
    ni = pl.num_programs(1)
    nj = pl.num_programs(2)

    @pl.when(jnp.logical_and(i == 0, j == 0))
    def _():
        acc_ref[...] = jnp.zeros_like(acc_ref)

    @pl.when(j == 0)
    def _():
        rc_ref[...] = jnp.zeros_like(rc_ref)
        rs_ref[...] = jnp.zeros_like(rs_ref)

    # Stream native-dtype tiles; accumulate row sums in f32
    # (v5e VPU has no bf16 ALU, and f32 keeps long-row sums accurate).
    rc_ref[...] += jnp.sum(c_ref[...].astype(jnp.float32), axis=1, keepdims=True)
    rs_ref[...] += jnp.sum(s_ref[...].astype(jnp.float32), axis=1, keepdims=True)

    # Finished the feature axis for this row block: fold into the scalar acc.
    @pl.when(j == nj - 1)
    def _():
        acc_ref[...] += jnp.sum(rc_ref[...] * rs_ref[...])

    # Last step of this parallel slice: emit the (scaled) partial.
    @pl.when(jnp.logical_and(i == ni - 1, j == nj - 1))
    def _():
        out_ref[...] = jnp.broadcast_to(acc_ref[...] * scale, out_ref.shape)


def diff_loss(common, specific, *, tile_budget_bytes=_DEFAULT_TILE_BUDGET):
    if common.shape != specific.shape:
        raise ValueError("Common feature and specific feature must have same shape!!!")
    B, S = int(common.shape[0]), int(common.shape[1])
    N = int(np.prod(common.shape[2:]))
    BS = B * S

    dtype = common.dtype
    itemsize = jnp.dtype(dtype).itemsize
    # Sublane alignment for the second-to-last block dim (packed dtypes).
    row_align = max(8, 32 // itemsize)

    # ---- tile sizing: biggest tiles that fit the VMEM budget ----------------
    n_pad = _round_up(N, _LANE)
    if 256 * n_pad * itemsize <= tile_budget_bytes:
        # Keep the whole feature dim on the lane axis.
        block_cols = n_pad
    else:
        # N too large: tile the feature axis so block_rows can stay >= ~256.
        block_cols = max(_LANE, (tile_budget_bytes // (256 * itemsize)) // _LANE * _LANE)
    col_blocks = -(-n_pad // block_cols)
    n_pad = col_blocks * block_cols

    block_rows = tile_budget_bytes // (block_cols * itemsize)
    block_rows = max(row_align, (block_rows // row_align) * row_align)
    block_rows = min(block_rows, _round_up(BS, row_align))

    total_row_blocks = -(-BS // block_rows)
    # Shard the row-block loop across the 2 TensorCores on v7x; no-op on 1-TC.
    num_par = 2 if total_row_blocks >= 2 else 1
    row_blocks_per_par = -(-total_row_blocks // num_par)
    bs_pad = num_par * row_blocks_per_par * block_rows

    c2 = common.reshape(BS, N)
    s2 = specific.reshape(BS, N)
    if bs_pad != BS or n_pad != N:
        # Zero padding is exact: padded rows/cols contribute 0 to sum(c)*sum(p).
        c2 = jnp.pad(c2, ((0, bs_pad - BS), (0, n_pad - N)))
        s2 = jnp.pad(s2, ((0, bs_pad - BS), (0, n_pad - N)))

    # diff = (1/(B*S)) * sum_{b,s} sum(c)*sum(p) / N^2
    scale = 1.0 / (float(B) * float(S) * float(N) * float(N))

    tile_bytes = block_rows * block_cols * itemsize
    # 2 inputs x 2 pipeline buffers x tile, plus headroom; capped below the
    # smallest physical VMEM (v7x: 64 MiB per TensorCore).
    vmem_limit = min(64 << 20, max(32 << 20, 4 * tile_bytes + (8 << 20)))

    out = pl.pallas_call(
        functools.partial(_diffloss_kernel, scale=scale),
        out_shape=jax.ShapeDtypeStruct((num_par * 8, _LANE), jnp.float32),
        grid_spec=pltpu.PrefetchScalarGridSpec(
            num_scalar_prefetch=0,
            grid=(num_par, row_blocks_per_par, col_blocks),
            in_specs=[
                pl.BlockSpec((block_rows, block_cols),
                             lambda p, i, j: (p * row_blocks_per_par + i, j)),
                pl.BlockSpec((block_rows, block_cols),
                             lambda p, i, j: (p * row_blocks_per_par + i, j)),
            ],
            out_specs=pl.BlockSpec((8, _LANE), lambda p, i, j: (p, 0)),
            scratch_shapes=[
                pltpu.VMEM((1, 1), jnp.float32),           # scalar accumulator
                pltpu.VMEM((block_rows, 1), jnp.float32),   # per-row sum of c
                pltpu.VMEM((block_rows, 1), jnp.float32),   # per-row sum of s
            ],
        ),
        compiler_params=pltpu.CompilerParams(
            dimension_semantics=("parallel", "arbitrary", "arbitrary"),
            vmem_limit_bytes=vmem_limit,
        ),
    )(c2, s2)
    # One lane-dense (8,128) block per parallel slice, all carrying the same
    # scaled partial; pick one value per slice and sum.
    return jnp.sum(out[::8, 0])


def _diff_loss_ref(common, specific):
    B, S = common.shape[0], common.shape[1]
    N = int(np.prod(common.shape[2:]))
    c = common.reshape(B, S, N).astype(jnp.float32)
    p = specific.reshape(B, S, N).astype(jnp.float32)
    per_bs = jnp.sum(c, axis=-1) * jnp.sum(p, axis=-1) / (N * N)  # (B, S)
    return jnp.mean(jnp.mean(per_bs, axis=1), axis=0)


if __name__ == "__main__":
    key = jax.random.PRNGKey(0)
    k1, k2, k3, k4, k5, k6 = jax.random.split(key, 6)

    # Main case: (batch=2, seq=8, channels=4, spatial=16x16), f32.
    common = jax.random.normal(k1, (2, 8, 4, 16, 16), dtype=jnp.float32)
    specific = jax.random.normal(k2, (2, 8, 4, 16, 16), dtype=jnp.float32)
    out = jax.block_until_ready(diff_loss(common, specific))
    ref = jax.block_until_ready(_diff_loss_ref(common, specific))
    np.testing.assert_allclose(np.asarray(out), np.asarray(ref), rtol=1e-4, atol=1e-6)

    # Exercise the multi-block path (2-way parallel axis + feature tiling) by
    # shrinking the tile budget on a modest-size input.
    c_big = jax.random.normal(k3, (16, 16, 4, 8, 8), dtype=jnp.float32)
    s_big = jax.random.normal(k4, (16, 16, 4, 8, 8), dtype=jnp.float32)
    out2 = jax.block_until_ready(diff_loss(c_big, s_big, tile_budget_bytes=64 * 1024))
    ref2 = jax.block_until_ready(_diff_loss_ref(c_big, s_big))
    np.testing.assert_allclose(np.asarray(out2), np.asarray(ref2), rtol=1e-4, atol=1e-6)

    # Exercise zero-padding of ragged rows/cols (BS=6, N=300).
    c_rag = jax.random.normal(k5, (2, 3, 3, 10, 10), dtype=jnp.float32)
    s_rag = jax.random.normal(k6, (2, 3, 3, 10, 10), dtype=jnp.float32)
    out3 = jax.block_until_ready(diff_loss(c_rag, s_rag, tile_budget_bytes=64 * 1024))
    ref3 = jax.block_until_ready(_diff_loss_ref(c_rag, s_rag))
    np.testing.assert_allclose(np.asarray(out3), np.asarray(ref3), rtol=1e-4, atol=1e-6)

    print("KERNEL_OK")
</pallas_src>

<mosaic_0001>
module attributes {stable_mosaic.version = 11 : i64} {
  func.func @_diffloss_kernel(%arg0: i32, %arg1: i32, %arg2: i32, %arg3: memref<16x1024xf32, #tpu.memory_space<vmem>>, %arg4: memref<16x1024xf32, #tpu.memory_space<vmem>>, %arg5: memref<8x128xf32, #tpu.memory_space<vmem>>, %arg6: memref<1x1xf32, #tpu.memory_space<vmem>>, %arg7: memref<16x1xf32, #tpu.memory_space<vmem>>, %arg8: memref<16x1xf32, #tpu.memory_space<vmem>>) attributes {dimension_semantics = [#tpu.dimension_semantics<parallel>, #tpu.dimension_semantics<arbitrary>, #tpu.dimension_semantics<arbitrary>], iteration_bounds = array<i64: 1, 1, 1>, scalar_prefetch = 0 : i64, scratch_operands = 3 : i64, tpu.core_type = #tpu.core_type<tc>, window_params = [{transform_indices = @transform_0, window_bounds = array<i64: 16, 1024>}, {transform_indices = @transform_1, window_bounds = array<i64: 16, 1024>}, {transform_indices = @transform_2, window_bounds = array<i64: 8, 128>}]} {
    %c0_i32 = arith.constant 0 : i32
    %0 = arith.cmpi eq, %arg1, %c0_i32 : i32
    %c0_i32_0 = arith.constant 0 : i32
    %1 = arith.cmpi eq, %arg2, %c0_i32_0 : i32
    %2 = arith.andi %0, %1 : i1
    %3 = arith.extui %2 : i1 to i32
    %c0_i32_1 = arith.constant 0 : i32
    %4 = arith.cmpi ne, %3, %c0_i32_1 : i32
    scf.if %4 {
      %cst_21 = arith.constant 0.000000e+00 : f32
      %28 = vector.broadcast %cst_21 : f32 to vector<1x1xf32>
      %c0_22 = arith.constant 0 : index
      %c0_23 = arith.constant 0 : index
      %29 = vector.load %arg6[%c0_22, %c0_23] : memref<1x1xf32, #tpu.memory_space<vmem>>, vector<1x1xf32>
      tpu.vector_store %arg6[%c0_22, %c0_23], %28 {strides = array<i32>} : memref<1x1xf32, #tpu.memory_space<vmem>>, vector<1x1xf32>,
    } else {
    }
    %c0_i32_2 = arith.constant 0 : i32
    %5 = arith.cmpi eq, %arg2, %c0_i32_2 : i32
    %6 = arith.extui %5 : i1 to i32
    %c0_i32_3 = arith.constant 0 : i32
    %7 = arith.cmpi ne, %6, %c0_i32_3 : i32
    scf.if %7 {
      %cst_21 = arith.constant 0.000000e+00 : f32
      %28 = vector.broadcast %cst_21 : f32 to vector<16x1xf32>
      %c0_22 = arith.constant 0 : index
      %c0_23 = arith.constant 0 : index
      %29 = vector.load %arg7[%c0_22, %c0_23] : memref<16x1xf32, #tpu.memory_space<vmem>>, vector<16x1xf32>
      tpu.vector_store %arg7[%c0_22, %c0_23], %28 {strides = array<i32>} : memref<16x1xf32, #tpu.memory_space<vmem>>, vector<16x1xf32>,
      %cst_24 = arith.constant 0.000000e+00 : f32
      %30 = vector.broadcast %cst_24 : f32 to vector<16x1xf32>
      %c0_25 = arith.constant 0 : index
      %c0_26 = arith.constant 0 : index
      %31 = vector.load %arg8[%c0_25, %c0_26] : memref<16x1xf32, #tpu.memory_space<vmem>>, vector<16x1xf32>
      tpu.vector_store %arg8[%c0_25, %c0_26], %30 {strides = array<i32>} : memref<16x1xf32, #tpu.memory_space<vmem>>, vector<16x1xf32>,
    } else {
    }
    %c0 = arith.constant 0 : index
    %c0_4 = arith.constant 0 : index
    %8 = vector.load %arg7[%c0, %c0_4] : memref<16x1xf32, #tpu.memory_space<vmem>>, vector<16x1xf32>
    %c0_5 = arith.constant 0 : index
    %c0_6 = arith.constant 0 : index
    %9 = vector.load %arg3[%c0_5, %c0_6] : memref<16x1024xf32, #tpu.memory_space<vmem>>, vector<16x1024xf32>
    %cst = arith.constant dense<0.000000e+00> : vector<16xf32>
    %10 = vector.multi_reduction <add>, %9, %cst [1] : vector<16x1024xf32> to vector<16xf32>
    %11 = vector.shape_cast %10 : vector<16xf32> to vector<16x1xf32>
    %12 = arith.addf %8, %11 : vector<16x1xf32>
    %c0_7 = arith.constant 0 : index
    %c0_8 = arith.constant 0 : index
    %13 = vector.load %arg7[%c0_7, %c0_8] : memref<16x1xf32, #tpu.memory_space<vmem>>, vector<16x1xf32>
    tpu.vector_store %arg7[%c0_7, %c0_8], %12 {strides = array<i32>} : memref<16x1xf32, #tpu.memory_space<vmem>>, vector<16x1xf32>,
    %c0_9 = arith.constant 0 : index
    %c0_10 = arith.constant 0 : index
    %14 = vector.load %arg8[%c0_9, %c0_10] : memref<16x1xf32, #tpu.memory_space<vmem>>, vector<16x1xf32>
    %c0_11 = arith.constant 0 : index
    %c0_12 = arith.constant 0 : index
    %15 = vector.load %arg4[%c0_11, %c0_12] : memref<16x1024xf32, #tpu.memory_space<vmem>>, vector<16x1024xf32>
    %cst_13 = arith.constant dense<0.000000e+00> : vector<16xf32>
    %16 = vector.multi_reduction <add>, %15, %cst_13 [1] : vector<16x1024xf32> to vector<16xf32>
    %17 = vector.shape_cast %16 : vector<16xf32> to vector<16x1xf32>
    %18 = arith.addf %14, %17 : vector<16x1xf32>
    %c0_14 = arith.constant 0 : index
    %c0_15 = arith.constant 0 : index
    %19 = vector.load %arg8[%c0_14, %c0_15] : memref<16x1xf32, #tpu.memory_space<vmem>>, vector<16x1xf32>
    tpu.vector_store %arg8[%c0_14, %c0_15], %18 {strides = array<i32>} : memref<16x1xf32, #tpu.memory_space<vmem>>, vector<16x1xf32>,
    %c0_i32_16 = arith.constant 0 : i32
    %20 = arith.cmpi eq, %arg2, %c0_i32_16 : i32
    %21 = arith.extui %20 : i1 to i32
    %c0_i32_17 = arith.constant 0 : i32
    %22 = arith.cmpi ne, %21, %c0_i32_17 : i32
    scf.if %22 {
      %c0_21 = arith.constant 0 : index
      %c0_22 = arith.constant 0 : index
      %28 = vector.load %arg6[%c0_21, %c0_22] : memref<1x1xf32, #tpu.memory_space<vmem>>, vector<1x1xf32>
      %c0_23 = arith.constant 0 : index
      %c0_24 = arith.constant 0 : index
      %29 = vector.load %arg7[%c0_23, %c0_24] : memref<16x1xf32, #tpu.memory_space<vmem>>, vector<16x1xf32>
      %c0_25 = arith.constant 0 : index
      %c0_26 = arith.constant 0 : index
      %30 = vector.load %arg8[%c0_25, %c0_26] : memref<16x1xf32, #tpu.memory_space<vmem>>, vector<16x1xf32>
      %31 = arith.mulf %29, %30 : vector<16x1xf32>
      %32 = vector.shape_cast %31 : vector<16x1xf32> to vector<1x16x1xf32>
      %cst_27 = arith.constant dense<0.000000e+00> : vector<1xf32>
      %33 = vector.multi_reduction <add>, %32, %cst_27 [1, 2] : vector<1x16x1xf32> to vector<1xf32>
      %34 = vector.shape_cast %33 : vector<1xf32> to vector<1x1x1xf32>
      %35 = vector.extract %34[0, 0, 0] : f32 from vector<1x1x1xf32>
      %36 = vector.broadcast %35 : f32 to vector<1x1xf32>
      %37 = arith.addf %28, %36 : vector<1x1xf32>
      %c0_28 = arith.constant 0 : index
      %c0_29 = arith.constant 0 : index
      %38 = vector.load %arg6[%c0_28, %c0_29] : memref<1x1xf32, #tpu.memory_space<vmem>>, vector<1x1xf32>
      tpu.vector_store %arg6[%c0_28, %c0_29], %37 {strides = array<i32>} : memref<1x1xf32, #tpu.memory_space<vmem>>, vector<1x1xf32>,
    } else {
    }
    %c0_i32_18 = arith.constant 0 : i32
    %23 = arith.cmpi eq, %arg1, %c0_i32_18 : i32
    %c0_i32_19 = arith.constant 0 : i32
    %24 = arith.cmpi eq, %arg2, %c0_i32_19 : i32
    %25 = arith.andi %23, %24 : i1
    %26 = arith.extui %25 : i1 to i32
    %c0_i32_20 = arith.constant 0 : i32
    %27 = arith.cmpi ne, %26, %c0_i32_20 : i32
    scf.if %27 {
      %c0_21 = arith.constant 0 : index
      %c0_22 = arith.constant 0 : index
      %28 = vector.load %arg6[%c0_21, %c0_22] : memref<1x1xf32, #tpu.memory_space<vmem>>, vector<1x1xf32>
      %cst_23 = arith.constant 5.96046448E-8 : f32
      %29 = vector.broadcast %cst_23 : f32 to vector<1x1xf32>
      %30 = arith.mulf %28, %29 : vector<1x1xf32>
      %31 = vector.shape_cast %30 : vector<1x1xf32> to vector<1x1xf32>
      %32 = vector.broadcast %31 : vector<1x1xf32> to vector<8x128xf32>
      %c0_24 = arith.constant 0 : index
      %c0_25 = arith.constant 0 : index
      %33 = vector.load %arg5[%c0_24, %c0_25] : memref<8x128xf32, #tpu.memory_space<vmem>>, vector<8x128xf32>
      tpu.vector_store %arg5[%c0_24, %c0_25], %32 {strides = array<i32>} : memref<8x128xf32, #tpu.memory_space<vmem>>, vector<8x128xf32>,
    } else {
    }
    return
  }
  func.func @transform_0(%arg0: i32, %arg1: i32, %arg2: i32) -> (i32, i32) {
    %c1_i32 = arith.constant 1 : i32
    %0 = arith.muli %arg0, %c1_i32 : i32
    %1 = arith.addi %0, %arg1 : i32
    %c0_i32 = arith.constant 0 : i32
    return %1, %arg2 : i32, i32
  }
  func.func @transform_1(%arg0: i32, %arg1: i32, %arg2: i32) -> (i32, i32) {
    %c1_i32 = arith.constant 1 : i32
    %0 = arith.muli %arg0, %c1_i32 : i32
    %1 = arith.addi %0, %arg1 : i32
    %c0_i32 = arith.constant 0 : i32
    return %1, %arg2 : i32, i32
  }
  func.func @transform_2(%arg0: i32, %arg1: i32, %arg2: i32) -> (i32, i32) {
    %c0_i32 = arith.constant 0 : i32
    %c0_i32_0 = arith.constant 0 : i32
    return %arg0, %c0_i32 : i32, i32
  }
}

</mosaic_0001>

<bundles_post_ra>
// kernel: tpu_custom_call.1
= control target key start
LH: loop header
LB: loop body
LE: loop exit
PB: predicated region body
PF: predicated region fallthrough
CT: control target
= control target key end

     0   :  { %7 = vsyncpa [#allocation6], 0  ;;  %s365_s0 = inlined_call_operand.hbm [shape: f32[16,1024], index: 0, kind: input, shape index: {}]   ;;  %s366_s1 = inlined_call_operand.hbm [shape: f32[16,1024], index: 1, kind: input, shape index: {}]   ;;  %s367_s2 = inlined_call_operand.hbm [shape: f32[8,128], index: 2, kind: output, shape index: {}]  }
   0x1   :  { %8 = vsyncpa [#allocation9], 0 }
   0x2   :  { %9 = vsyncpa [#allocation7], 0  ;;  %s290_s9 = smov [#allocation5]   ;;  %s218_s13 = scalar_lea.hbm %s365_s0, 2048 }
   0x3   :  { %s20_s10 = sshll.u32 %s290_s9, 4  ;;  %p219_p0 = scmp.ne.s32.totalorder %s365_s0, %s218_s13  ;;  %s21_s10 = int_to_ptr.vmem [resolvable:$true] %s20_s10 }
   0x4   :  { %p222_p1 = scmp.lt.u32.totalorder %s218_s13, %s365_s0 }
   0x6   :  { %p224_p2 = pnand %p222_p1, %p219_p0 }
   0x8   :  { %227 = shalt.err (!%p224_p2)
}
   0x9   :  { %s228_s18 = scalar_lea.vmem %s21_s10, 2048  ;;  %p233_p4 = scmp.lt.s32.totalorder %s21_s10, %s21_s10 }
   0xa   :  { %p229_p3 = scmp.ne.s32.totalorder %s21_s10, %s228_s18  ;;  %p234_p5 = scmp.lt.s32.totalorder %s228_s18, %s228_s18 }
   0xc   :  { %p235_p6 = por %p234_p5, %p233_p4 }
   0xe   :  { %p236_p7 = pnand %p235_p6, %p229_p3 }
  0x10   :  { %239 = shalt.err (!%p236_p7)
}
  0x11   :  { %s291_s19 = smov 1024   ;;  %s292_s20 = smov 64  }
  0x12   :  { %26 = dma.hbm_to_vmem [thread:$0]  %s365_s0, 2048, %s21_s10, [#allocation6], %s291_s19, %s291_s19, %s292_s20  }
  0x13   :  { %s293_s23 = smov [#allocation8]   ;;  %s240_s27 = scalar_lea.hbm %s366_s1, 2048 }
  0x14   :  { %s37_s24 = sshll.u32 %s293_s23, 4  ;;  %p241_p8 = scmp.ne.s32.totalorder %s366_s1, %s240_s27  ;;  %s38_s24 = int_to_ptr.vmem [resolvable:$true] %s37_s24 }
  0x15   :  { %p244_p9 = scmp.lt.u32.totalorder %s240_s27, %s366_s1 }
  0x17   :  { %p246_p10 = pnand %p244_p9, %p241_p8 }
  0x19   :  { %249 = shalt.err (!%p246_p10)
}
  0x1a   :  { %s250_s4 = scalar_lea.vmem %s38_s24, 2048  ;;  %p255_p12 = scmp.lt.s32.totalorder %s38_s24, %s38_s24 }
  0x1b   :  { %p251_p11 = scmp.ne.s32.totalorder %s38_s24, %s250_s4  ;;  %p256_p13 = scmp.lt.s32.totalorder %s250_s4, %s250_s4 }
  0x1d   :  { %p257_p0 = por %p256_p13, %p255_p12 }
  0x1f   :  { %p258_p1 = pnand %p257_p0, %p251_p11 }
  0x21   :  { %261 = shalt.err (!%p258_p1)
}
  0x22   :  { %43 = dma.hbm_to_vmem [thread:$0]  %s366_s1, 2048, %s38_s24, [#allocation9], %s291_s19, %s291_s19, %s292_s20  }
  0x23   :  { %284 = dma.done.wait [#allocation6], 2048  }
  0x24   :  { %285 = vsyncadd [#allocation6], 4294965248 }
  0x25   :  { %286 = dma.done.wait [#allocation9], 2048  }
  0x26   :  { %287 = vsyncadd [#allocation9], 4294965248  ;;  %vm65_vm0 = vcmask 7168   ;;  %v294_v0 = vmov 0.0   ;;  %v113_v1 = vld [vmem:[#allocation8] sm:$0xff]  ;;  %v114_v2 = vld [vmem:[#allocation8 + $0x8] sm:$0xff] }
  0x27   :  { %68 = vst.msk [vmem:[#allocation4] sm:$0xff] %vm65_vm0, %v294_v0  ;;  %66 = vst.msk [vmem:[#allocation3] sm:$0xff] %vm65_vm0, %v294_v0  ;;  %v115_v3 = vld [vmem:[#allocation8 + $0x10] sm:$0xff]  ;;  %v129_v4 = vadd.f32 %v114_v2, %v113_v1  ;;  %v116_v5 = vld [vmem:[#allocation8 + $0x18] sm:$0xff]  ;;  %vm60_vm1 = vcmask 0   ;;  %s296_s6 = smov [#allocation10]  }
  0x28   :  { %67 = vst.msk [vmem:[#allocation3 + $0x8] sm:$0xff] %vm65_vm0, %v294_v0  ;;  %69 = vst.msk [vmem:[#allocation4 + $0x8] sm:$0xff] %vm65_vm0, %v294_v0  ;;  %v72_v6 = vld [vmem:[#allocation5] sm:$0xff]  ;;  %v73_v8 = vld [vmem:[#allocation5 + $0x8] sm:$0xff]  ;;  %s197_s7 = sshll.u32 %s296_s6, 4  ;;  %s198_s7 = int_to_ptr.vmem [resolvable:$true] %s197_s7 }
  0x29   :  { %v130_v7 = vadd.f32 %v129_v4, %v115_v3  ;;  %v74_v9 = vld [vmem:[#allocation5 + $0x10] sm:$0xff]  ;;  %v117_v10 = vld [vmem:[#allocation8 + $0x20] sm:$0xff]  ;;  %v88_v11 = vadd.f32 %v73_v8, %v72_v6  ;;  %v75_v13 = vld [vmem:[#allocation5 + $0x18] sm:$0xff]  ;;  %61 = vst.msk [vmem:[#allocation2] sm:$0x1] %vm60_vm1, %v294_v0  ;;  %s262_s8 = scalar_lea.vmem %s198_s7, 128  ;;  %p267_p3 = scmp.lt.s32.totalorder %s198_s7, %s198_s7 }
  0x2a   :  { %v121_v14 = vld [vmem:[#allocation8 + $0x40] sm:$0xff]  ;;  %v122_v15 = vld [vmem:[#allocation8 + $0x48] sm:$0xff]  ;;  %v123_v18 = vld [vmem:[#allocation8 + $0x50] sm:$0xff]  ;;  %p263_p2 = scmp.ne.s32.totalorder %s198_s7, %s262_s8  ;;  %p268_p4 = scmp.lt.s32.totalorder %s262_s8, %s262_s8 }
  0x2b   :  { %v131_v12 = vadd.f32 %v130_v7, %v116_v5  ;;  %v118_v16 = vld [vmem:[#allocation8 + $0x28] sm:$0xff]  ;;  %v89_v17 = vadd.f32 %v88_v11, %v74_v9  ;;  %v138_v19 = vadd.f32 %v122_v15, %v121_v14  ;;  %v119_v20 = vld [vmem:[#allocation8 + $0x30] sm:$0xff]  ;;  %v76_v22 = vld [vmem:[#allocation5 + $0x20] sm:$0xff] }
  0x2c   :  { %v124_v23 = vld [vmem:[#allocation8 + $0x58] sm:$0xff]  ;;  %v80_v26 = vld [vmem:[#allocation5 + $0x40] sm:$0xff]  ;;  %v81_v27 = vld [vmem:[#allocation5 + $0x48] sm:$0xff]  ;;  %p269_p5 = por %p268_p4, %p267_p3 }
  0x2d   :  { %v132_v21 = vadd.f32 %v131_v12, %v117_v10  ;;  %v90_v24 = vadd.f32 %v89_v17, %v75_v13  ;;  %v139_v25 = vadd.f32 %v138_v19, %v123_v18  ;;  %v82_v28 = vld [vmem:[#allocation5 + $0x50] sm:$0xff]  ;;  %v77_v30 = vld [vmem:[#allocation5 + $0x28] sm:$0xff]  ;;  %v125_v31 = vld [vmem:[#allocation8 + $0x60] sm:$0xff]  ;;  %v97_v32 = vadd.f32 %v81_v27, %v80_v26 }
  0x2e   :  { %v120_v33 = vld [vmem:[#allocation8 + $0x38] sm:$0xff]  ;;  %v78_v38 = vld [vmem:[#allocation5 + $0x30] sm:$0xff]  ;;  %v126_v39 = vld [vmem:[#allocation8 + $0x68] sm:$0xff]  ;;  %v295_v19 = vmov 0   ;;  %p270_p6 = pnand %p269_p5, %p263_p2 }
  0x2f   :  { %v133_v29 = vadd.f32 %v132_v21, %v118_v16  ;;  %v91_v34 = vadd.f32 %v90_v24, %v76_v22  ;;  %v140_v35 = vadd.f32 %v139_v25, %v124_v23  ;;  %v83_v36 = vld [vmem:[#allocation5 + $0x58] sm:$0xff]  ;;  %v98_v40 = vadd.f32 %v97_v32, %v82_v28  ;;  %v84_v43 = vld [vmem:[#allocation5 + $0x60] sm:$0xff]  ;;  %v127_v46 = vld [vmem:[#allocation8 + $0x70] sm:$0xff]  ;;  %216 = vset.pattern.permute.xlu1 %v295_v19 }
  0x30   :  { %v79_v45 = vld [vmem:[#allocation5 + $0x38] sm:$0xff]  ;;  %v85_v50 = vld [vmem:[#allocation5 + $0x68] sm:$0xff]  ;;  %v86_v55 = vld [vmem:[#allocation5 + $0x70] sm:$0xff]  ;;  %217 = vset.pattern.permute.xlu0 %v295_v19 }
  0x31   :  { %v134_v37 = vadd.f32 %v133_v29, %v119_v20  ;;  %v92_v41 = vadd.f32 %v91_v34, %v77_v30  ;;  %v141_v42 = vadd.f32 %v140_v35, %v125_v31  ;;  %v99_v47 = vadd.f32 %v98_v40, %v83_v36  ;;  %v128_v51 = vld [vmem:[#allocation8 + $0x78] sm:$0xff]  ;;  %v111_v61 = vld [vmem:[#allocation4] sm:$0xff]  ;;  %v70_v1 = vld [vmem:[#allocation3] sm:$0xff] }
  0x32   :  { %v87_v58 = vld [vmem:[#allocation5 + $0x78] sm:$0xff]  ;;  %v71_v7 = vld [vmem:[#allocation3 + $0x8] sm:$0xff]  ;;  %v182_v30 = vlaneseq }
  0x33   :  { %v135_v44 = vadd.f32 %v134_v37, %v120_v33  ;;  %v93_v48 = vadd.f32 %v92_v41, %v78_v38  ;;  %v142_v49 = vadd.f32 %v141_v42, %v126_v39  ;;  %v100_v52 = vadd.f32 %v99_v47, %v84_v43  ;;  %v112_v3 = vld [vmem:[#allocation4 + $0x8] sm:$0xff] }
  0x34   :  { %v154_v27 = vld [vmem:[#allocation2] sm:$0x1]  ;;  %v183_v31 = vshrl.u32 %v182_v30, 7 }
  0x35   :  { %136 = vadd.xlane.f32.xlu1 %v135_v44  ;;  %v94_v53 = vadd.f32 %v93_v48, %v79_v45  ;;  %v143_v54 = vadd.f32 %v142_v49, %v127_v46  ;;  %v101_v56 = vadd.f32 %v100_v52, %v85_v50 }
  0x36   :  { %v184_v0 = vsub.s32 0, %v183_v31 }
  0x37   :  { %95 = vadd.xlane.f32.xlu0 %v94_v53  ;;  %v144_v57 = vadd.f32 %v143_v54, %v128_v51  ;;  %v102_v59 = vadd.f32 %v101_v56, %v86_v55 }
  0x39   :  { %145 = vadd.xlane.f32.xlu1 %v144_v57  ;;  %v103_v60 = vadd.f32 %v102_v59, %v87_v58 }
  0x3b   :  { %104 = vadd.xlane.f32.xlu0 %v103_v60 }
  0xc2   :  { %v137_v62 = vpop.xlane.xlu1 %136 }
  0xc3   :  { %v147_v63 = vadd.f32 %v137_v62, %v111_v61 }
  0xc4   :  { %v96_v2 = vpop.xlane.xlu0 %95 }
  0xc5   :  { %149 = vst.msk [vmem:[#allocation4] sm:$0xff] %vm65_vm0, %v147_v63  ;;  %v106_v4 = vadd.f32 %v96_v2, %v70_v1 }
  0xc6   :  { %v146_v5 = vpop.xlane.xlu1 %145 }
  0xc7   :  { %109 = vst.msk [vmem:[#allocation3] sm:$0xff] %vm65_vm0, %v106_v4  ;;  %v148_v6 = vadd.f32 %v146_v5, %v112_v3 }
  0xc8   :  { %v105_v8 = vpop.xlane.xlu0 %104 }
  0xc9   :  { %150 = vst.msk [vmem:[#allocation4 + $0x8] sm:$0xff] %vm65_vm0, %v148_v6  ;;  %v107_v9 = vadd.f32 %v105_v8, %v71_v7 }
  0xcb   :  { %110 = vst.msk [vmem:[#allocation3 + $0x8] sm:$0xff] %vm65_vm0, %v107_v9 }
  0xcc   :  { %v157_v11 = vld [vmem:[#allocation4] sm:$0xff] }
  0xce   :  { %v155_v10 = vld [vmem:[#allocation3] sm:$0xff] }
  0xcf   :  { %v159_v13 = vmul.f32 %v157_v11, %v155_v10 }
  0xd0   :  { %v158_v12 = vld [vmem:[#allocation4 + $0x8] sm:$0xff] }
  0xd1   :  { %v161_v16 = vsel %vm65_vm0, %v159_v13, 0.0 }
  0xd2   :  { %v156_v14 = vld [vmem:[#allocation3 + $0x8] sm:$0xff] }
  0xd3   :  { %v160_v15 = vmul.f32 %v158_v12, %v156_v14 }
  0xd5   :  { %v162_v17 = vsel %vm65_vm0, %v160_v15, 0.0 }
  0xd6   :  { %v163_v18 = vadd.f32 %v162_v17, %v161_v16 }
  0xd8   :  { %164 = vadd.xlane.f32.xlu0 %v163_v18 }
 0x165   :  { %v165_v20 = vpop.xlane.xlu0 %164 }
 0x166   :  { %v166_v21 = vrot.slane %v165_v20, 4 }
 0x168   :  { %v167_v22 = vadd.f32 %v166_v21, %v165_v20 }
 0x16a   :  { %v168_v23 = vrot.slane %v167_v22, 2 }
 0x16c   :  { %v169_v24 = vadd.f32 %v168_v23, %v167_v22 }
 0x16e   :  { %v170_v25 = vrot.slane %v169_v24, 1 }
 0x170   :  { %v171_v26 = vadd.f32 %v170_v25, %v169_v24 }
 0x172   :  { %207 = vpush %v171_v26 }
 0x1a3   :  { %s208_s1 = spop %207 }
 0x1a4   :  { %v173_v28 = vstv %s208_s1 }
 0x1a5   :  { %v174_v29 = vadd.f32 %v173_v28, %v154_v27 }
 0x1a7   :  { %176 = vst.msk [vmem:[#allocation2] sm:$0x1] %vm60_vm1, %v174_v29 }
 0x1ae   :  { %v179_v32 = vld [vmem:[#allocation2] sm:$0x1] }
 0x1af   :  { %v180_v33 = vmul.f32 5.9604645e-08, %v179_v32 }
 0x1b1   :  { %v185_v34 = vrot.slane %v180_v33, %v184_v0 }
 0x1b3   :  { %187 = vperm.xlu1 %216, %v185_v34  }
 0x232   :  { %v188_v35 = vpop.permute.xlu1 %187 }
 0x233   :  { %190 = vst [vmem:[#allocation10] sm:$0xff] %v188_v35 }
 0x234   :  { %273 = shalt.err (!%p270_p6)
}
 0x235   :  { %s274_s11 = scalar_lea.hbm %s367_s2, 128 }
 0x236   :  { %p275_p7 = scmp.ne.s32.totalorder %s367_s2, %s274_s11  ;;  %p278_p8 = scmp.lt.u32.totalorder %s274_s11, %s367_s2 }
 0x238   :  { %p280_p9 = pnand %p278_p8, %p275_p7 }
 0x23a   :  { %283 = shalt.err (!%p280_p9)
}
 0x23b   :  { %200 = dma.vmem_to_hbm [thread:$0]  %s198_s7, 128, %s367_s2, [#allocation7]  }
 0x23c   :  { %288 = dma.done.wait [#allocation7], 128  }
 0x23d   :  { %289 = vsyncadd [#allocation7], 4294967168 }
 0x23e   :  { %204 = vsyncpa [#allocation6], 1 }
 0x23f   :  { %205 = vsyncpa [#allocation9], 1 }
 0x240   :  { %206 = vsyncpa [#allocation7], 1 }

</bundles_post_ra>
